<compile_context>
chip_gen: v7x
topology: tpu7x:2x2x1
jax: 0.10.0
libtpu: 0.0.40
codegen_flags: <defaults>
</compile_context>

<pallas_src>
import jax
import jax.numpy as jnp
from jax import lax
from jax.experimental import pallas as pl
from jax.experimental.pallas import tpu as pltpu

_NUM_ITER_MAX = 5000   # numItermax in sinkhorn_torch
_STOP_THR = 0.005      # stopThr
_CHECK_EVERY = 20      # reference checks convergence when cpt % 20 == 1
# NOTE: the loop restructuring below is exactly equivalent to the reference loop
# because _NUM_ITER_MAX is a multiple of _CHECK_EVERY (checks at 1, 21, ..., 4981).


def _nstm_loss_kernel(alpha_ref, recw_ref,            # SMEM (1,1) scalars
                      x_ref, dt_ref, dw_ref, m_ref,   # VMEM tensors
                      rec_ref, sh_ref, joint_ref):    # SMEM (1,1) scalar outputs
    lam = alpha_ref[0, 0]
    rec_w = recw_ref[0, 0]

    x = x_ref[...]          # [B, V]
    a = dt_ref[...]         # [B, K]   (row form of the reference's a = doc_topic.T)
    b = dw_ref[...]         # [B, V]   (row form of the reference's b = doc_word.T)
    M = m_ref[...]          # [K, V]

    # TODO(synk): the PyTorch code prints a message if M contains NaN; debug-only side
    # effect with no influence on the returned losses, omitted here.

    kmat = jnp.exp(-M * lam)     # [K, V]
    kmat_t = kmat.T              # [V, K] — one small XLU transpose, hoisted out of the loop
    # TODO(synk): for production vocab sizes on v6e/v7x, feed the in-loop matmuls in bf16
    # (f32 accumulation) after validating that the 0.005 threshold still converges.

    n_topics = a.shape[1]
    u0 = jnp.full_like(a, 1.0 / n_topics)   # [B, K]  == ones_like(a)/a.size(0) row form
    v0 = jnp.ones_like(b)                   # [B, V]

    def plain_step(u):
        # column form: u = a / (K @ (b / (u.T @ K).T)); divisions via EUP reciprocal.
        t = b * pl.reciprocal(
            jnp.dot(u, kmat, preferred_element_type=jnp.float32), approx=False)     # [B, V]
        return a * pl.reciprocal(
            jnp.dot(t, kmat_t, preferred_element_type=jnp.float32), approx=False)   # [B, K]

    def check_step(u):
        # column form: v = b/(K.T@u); u = a/(K@v); bb = v*(K.T@u);
        #              err = || sum_V |bb - b| ||_inf over documents
        v = b / jnp.dot(u, kmat, preferred_element_type=jnp.float32)                # [B, V]
        u = a / jnp.dot(v, kmat_t, preferred_element_type=jnp.float32)              # [B, K]
        bb = v * jnp.dot(u, kmat, preferred_element_type=jnp.float32)               # [B, V]
        err = jnp.max(jnp.sum(jnp.abs(bb - b), axis=-1, keepdims=True))             # scalar
        return u, v, err

    def cond_fn(state):
        _, _, err, cpt = state
        return jnp.logical_and(err > jnp.float32(_STOP_THR),
                               cpt < jnp.int32(_NUM_ITER_MAX))

    def body_fn(state):
        u, v, err, cpt = state
        # The iteration with cpt % 20 == 1: plain update + committed convergence check.
        u = plain_step(u)
        cpt = cpt + 1
        u, v, err = check_step(u)

        # 19 plain-only iterations until the next check.  Skipped when converged
        # (matching the reference, which re-tests the loop condition every iteration).
        keep_going = err > jnp.float32(_STOP_THR)

        def run_rest(uu):
            # Tiny body + tiny carry: deliberate trace-time unroll of the 19 steps
            # (2 small matmuls each) for full scheduler visibility in the hot loop.
            for _ in range(_CHECK_EVERY - 1):
                uu = plain_step(uu)
            return uu

        u = lax.cond(keep_going, run_rest, lambda uu: uu, u)
        cpt = cpt + jnp.where(keep_going,
                              jnp.int32(_CHECK_EVERY - 1), jnp.int32(0))
        return u, v, err, cpt

    u, v, _, _ = lax.while_loop(
        cond_fn, body_fn, (u0, v0, jnp.float32(1.0), jnp.int32(0)))

    # Sinkhorn divergence per document, then mean:
    #   sum_K u * ((K*M) @ v)  ==  sum_V v * (u @ (K*M))   (bilinear form, lane-dense)
    sh_div = jnp.sum(v * jnp.dot(u, kmat * M, preferred_element_type=jnp.float32),
                     axis=-1, keepdims=True)                                        # [B, 1]
    sh_loss = jnp.mean(sh_div)

    # Reconstruction loss: -mean_B( sum_V( log_softmax(doc_topic @ (1 - M), dim=1) * x ) )
    # TODO(synk): at production vocab sizes on v7x (64 MiB VMEM) stream this epilogue as a
    # V-tiled pass so the [B, V] logits never coexist with the Sinkhorn working set.
    logits = jnp.dot(a, 1.0 - M, preferred_element_type=jnp.float32)                # [B, V]
    lmax = jnp.max(logits, axis=1, keepdims=True)
    lse = lmax + jnp.log(jnp.sum(jnp.exp(logits - lmax), axis=1, keepdims=True))
    log_probs = logits - lse
    rec_loss = -jnp.mean(jnp.sum(log_probs * x, axis=1, keepdims=True))

    joint_loss = rec_w * rec_loss + sh_loss

    rec_ref[0, 0] = rec_loss
    sh_ref[0, 0] = sh_loss
    joint_ref[0, 0] = joint_loss


def nstm_loss(x, doc_topic, doc_word, M, topic_embedding, sh_alpha, rec_loss_weight):
    """Pallas port of myLoss.forward. topic_embedding is accepted for signature parity
    with the PyTorch module but (exactly like the PyTorch forward) unused."""
    del topic_embedding
    x = x.astype(jnp.float32)
    doc_topic = doc_topic.astype(jnp.float32)
    doc_word = doc_word.astype(jnp.float32)
    M = M.astype(jnp.float32)

    alpha = jnp.full((1, 1), sh_alpha, jnp.float32)
    recw = jnp.full((1, 1), rec_loss_weight, jnp.float32)

    vmem = pltpu.MemorySpace.VMEM
    smem = pltpu.MemorySpace.SMEM

    rec, sh, joint = pl.pallas_call(
        _nstm_loss_kernel,
        out_shape=(jax.ShapeDtypeStruct((1, 1), jnp.float32),
                   jax.ShapeDtypeStruct((1, 1), jnp.float32),
                   jax.ShapeDtypeStruct((1, 1), jnp.float32)),
        in_specs=[
            pl.BlockSpec(memory_space=smem),   # sh_alpha
            pl.BlockSpec(memory_space=smem),   # rec_loss_weight
            pl.BlockSpec(memory_space=vmem),   # x          [B, V]
            pl.BlockSpec(memory_space=vmem),   # doc_topic  [B, K]
            pl.BlockSpec(memory_space=vmem),   # doc_word   [B, V]
            pl.BlockSpec(memory_space=vmem),   # M          [K, V]
        ],
        out_specs=(pl.BlockSpec(memory_space=smem),
                   pl.BlockSpec(memory_space=smem),
                   pl.BlockSpec(memory_space=smem)),
        compiler_params=pltpu.CompilerParams(vmem_limit_bytes=32 * 1024 * 1024),
    )(alpha, recw, x, doc_topic, doc_word, M)

    # TODO(synk): for production batch sizes (B >> 128), add a grid over documents
    # ("parallel" dimension semantics; megacore on v7x) with per-tile Sinkhorn loops.
    return rec[0, 0], sh[0, 0], joint[0, 0]


if __name__ == "__main__":
    key = jax.random.PRNGKey(0)
    B, K, V, E = 8, 8, 128, 64   # docs, topics, vocab, embedding dim

    k1, k2, k3, k4 = jax.random.split(key, 4)
    doc_topic = jax.nn.softmax(jax.random.normal(k1, (B, K), jnp.float32), axis=1)
    x = jax.random.uniform(k2, (B, V), jnp.float32, minval=0.1, maxval=2.0)  # BoW weights
    doc_word = x / jnp.sum(x, axis=1, keepdims=True)
    M = jax.random.uniform(k3, (K, V), jnp.float32, minval=0.02, maxval=1.0)  # cost matrix
    topic_embedding = jax.random.normal(k4, (K, E), jnp.float32)  # unused by forward
    sh_alpha = 20.0
    rec_loss_weight = 0.07

    rec_loss, sh_loss, joint_loss = jax.block_until_ready(
        nstm_loss(x, doc_topic, doc_word, M, topic_embedding,
                  sh_alpha, rec_loss_weight))

    assert bool(jnp.isfinite(rec_loss)) and bool(jnp.isfinite(sh_loss)) \
        and bool(jnp.isfinite(joint_loss))
    print("KERNEL_OK")
</pallas_src>

<mosaic_0001>
module attributes {stable_mosaic.version = 11 : i64} {
  func.func @_nstm_loss_kernel(%arg0: memref<1x1xf32, #tpu.memory_space<smem>>, %arg1: memref<1x1xf32, #tpu.memory_space<smem>>, %arg2: memref<8x128xf32, #tpu.memory_space<vmem>>, %arg3: memref<8x8xf32, #tpu.memory_space<vmem>>, %arg4: memref<8x128xf32, #tpu.memory_space<vmem>>, %arg5: memref<8x128xf32, #tpu.memory_space<vmem>>, %arg6: memref<1x1xf32, #tpu.memory_space<smem>>, %arg7: memref<1x1xf32, #tpu.memory_space<smem>>, %arg8: memref<1x1xf32, #tpu.memory_space<smem>>) attributes {dimension_semantics = [], scalar_prefetch = 0 : i64, scratch_operands = 0 : i64, tpu.core_type = #tpu.core_type<tc>} {
    %c0 = arith.constant 0 : index
    %c0_0 = arith.constant 0 : index
    %0 = memref.load %arg0[%c0, %c0_0] : memref<1x1xf32, #tpu.memory_space<smem>>
    %c0_1 = arith.constant 0 : index
    %c0_2 = arith.constant 0 : index
    %1 = memref.load %arg1[%c0_1, %c0_2] : memref<1x1xf32, #tpu.memory_space<smem>>
    %c0_3 = arith.constant 0 : index
    %c0_4 = arith.constant 0 : index
    %2 = vector.load %arg2[%c0_3, %c0_4] : memref<8x128xf32, #tpu.memory_space<vmem>>, vector<8x128xf32>
    %c0_5 = arith.constant 0 : index
    %c0_6 = arith.constant 0 : index
    %3 = vector.load %arg3[%c0_5, %c0_6] : memref<8x8xf32, #tpu.memory_space<vmem>>, vector<8x8xf32>
    %c0_7 = arith.constant 0 : index
    %c0_8 = arith.constant 0 : index
    %4 = vector.load %arg4[%c0_7, %c0_8] : memref<8x128xf32, #tpu.memory_space<vmem>>, vector<8x128xf32>
    %c0_9 = arith.constant 0 : index
    %c0_10 = arith.constant 0 : index
    %5 = vector.load %arg5[%c0_9, %c0_10] : memref<8x128xf32, #tpu.memory_space<vmem>>, vector<8x128xf32>
    %cst = arith.constant 0.000000e+00 : f32
    %6 = vector.broadcast %cst : f32 to vector<8x128xf32>
    %7 = arith.subf %6, %5 : vector<8x128xf32>
    %8 = vector.broadcast %0 : f32 to vector<8x128xf32>
    %9 = arith.mulf %7, %8 : vector<8x128xf32>
    %10 = math.exp %9 : vector<8x128xf32>
    %11 = tpu.transpose %10, [1, 0] : vector<8x128xf32> -> vector<128x8xf32>
    %cst_11 = arith.constant 1.250000e-01 : f32
    %12 = vector.broadcast %cst_11 : f32 to vector<8x8xf32>
    %cst_12 = arith.constant 1.000000e+00 : f32
    %13 = vector.broadcast %cst_12 : f32 to vector<8x128xf32>
    %cst_13 = arith.constant 1.000000e+00 : f32
    %c0_i32 = arith.constant 0 : i32
    %14:4 = scf.while (%arg9 = %12, %arg10 = %13, %arg11 = %cst_13, %arg12 = %c0_i32) : (vector<8x8xf32>, vector<8x128xf32>, f32, i32) -> (vector<8x8xf32>, vector<8x128xf32>, f32, i32) {
      %cst_32 = arith.constant 5.000000e-03 : f32
      %53 = arith.cmpf ogt, %arg11, %cst_32 : f32
      %c5000_i32 = arith.constant 5000 : i32
      %54 = arith.cmpi slt, %arg12, %c5000_i32 : i32
      %55 = arith.andi %53, %54 : i1
      scf.condition(%55) %arg9, %arg10, %arg11, %arg12 : vector<8x8xf32>, vector<8x128xf32>, f32, i32
    } do {
    ^bb0(%arg9: vector<8x8xf32>, %arg10: vector<8x128xf32>, %arg11: f32, %arg12: i32):
      %cst_32 = arith.constant dense<0.000000e+00> : vector<8x128xf32>
      %53 = tpu.matmul %arg9, %10, %cst_32 {dimension_numbers = #tpu.dot_dimension_numbers<[1], [0], [0], [1], [0, 0, 1, 1], [], []>} : vector<8x8xf32>, vector<8x128xf32>, vector<8x128xf32> -> vector<8x128xf32>
      %54 = tpu.reciprocal %53 : vector<8x128xf32> -> vector<8x128xf32>
      %55 = arith.mulf %4, %54 : vector<8x128xf32>
      %cst_33 = arith.constant dense<0.000000e+00> : vector<8x8xf32>
      %56 = tpu.matmul %55, %11, %cst_33 {dimension_numbers = #tpu.dot_dimension_numbers<[1], [0], [0], [1], [0, 0, 1, 1], [], []>} : vector<8x128xf32>, vector<128x8xf32>, vector<8x8xf32> -> vector<8x8xf32>
      %57 = tpu.reciprocal %56 : vector<8x8xf32> -> vector<8x8xf32>
      %58 = arith.mulf %3, %57 : vector<8x8xf32>
      %c1_i32 = arith.constant 1 : i32
      %59 = arith.addi %arg12, %c1_i32 : i32
      %cst_34 = arith.constant dense<0.000000e+00> : vector<8x128xf32>
      %60 = tpu.matmul %58, %10, %cst_34 {dimension_numbers = #tpu.dot_dimension_numbers<[1], [0], [0], [1], [0, 0, 1, 1], [], []>} : vector<8x8xf32>, vector<8x128xf32>, vector<8x128xf32> -> vector<8x128xf32>
      %61 = arith.divf %4, %60 : vector<8x128xf32>
      %cst_35 = arith.constant dense<0.000000e+00> : vector<8x8xf32>
      %62 = tpu.matmul %61, %11, %cst_35 {dimension_numbers = #tpu.dot_dimension_numbers<[1], [0], [0], [1], [0, 0, 1, 1], [], []>} : vector<8x128xf32>, vector<128x8xf32>, vector<8x8xf32> -> vector<8x8xf32>
      %63 = arith.divf %3, %62 : vector<8x8xf32>
      %cst_36 = arith.constant dense<0.000000e+00> : vector<8x128xf32>
      %64 = tpu.matmul %63, %10, %cst_36 {dimension_numbers = #tpu.dot_dimension_numbers<[1], [0], [0], [1], [0, 0, 1, 1], [], []>} : vector<8x8xf32>, vector<8x128xf32>, vector<8x128xf32> -> vector<8x128xf32>
      %65 = arith.mulf %61, %64 : vector<8x128xf32>
      %66 = arith.subf %65, %4 : vector<8x128xf32>
      %67 = math.absf %66 : vector<8x128xf32>
      %cst_37 = arith.constant dense<0.000000e+00> : vector<8xf32>
      %68 = vector.multi_reduction <add>, %67, %cst_37 [1] : vector<8x128xf32> to vector<8xf32>
      %69 = vector.shape_cast %68 : vector<8xf32> to vector<8x1xf32>
      %70 = vector.shape_cast %69 : vector<8x1xf32> to vector<1x8x1xf32>
      %cst_38 = arith.constant dense<0xFF800000> : vector<1xf32>
      %71 = vector.multi_reduction <maximumf>, %70, %cst_38 [1, 2] : vector<1x8x1xf32> to vector<1xf32>
      %72 = vector.shape_cast %71 : vector<1xf32> to vector<1x1x1xf32>
      %73 = vector.extract %72[0, 0, 0] : f32 from vector<1x1x1xf32>
      %cst_39 = arith.constant 5.000000e-03 : f32
      %74 = arith.cmpf ogt, %73, %cst_39 : f32
      %75 = arith.extui %74 : i1 to i32
      %c0_i32_40 = arith.constant 0 : i32
      %76 = arith.cmpi ne, %75, %c0_i32_40 : i32
      %77 = scf.if %76 -> (vector<8x8xf32>) {
        %cst_42 = arith.constant dense<0.000000e+00> : vector<8x128xf32>
        %80 = tpu.matmul %63, %10, %cst_42 {dimension_numbers = #tpu.dot_dimension_numbers<[1], [0], [0], [1], [0, 0, 1, 1], [], []>} : vector<8x8xf32>, vector<8x128xf32>, vector<8x128xf32> -> vector<8x128xf32>
        %81 = tpu.reciprocal %80 : vector<8x128xf32> -> vector<8x128xf32>
        %82 = arith.mulf %4, %81 : vector<8x128xf32>
        %cst_43 = arith.constant dense<0.000000e+00> : vector<8x8xf32>
        %83 = tpu.matmul %82, %11, %cst_43 {dimension_numbers = #tpu.dot_dimension_numbers<[1], [0], [0], [1], [0, 0, 1, 1], [], []>} : vector<8x128xf32>, vector<128x8xf32>, vector<8x8xf32> -> vector<8x8xf32>
        %84 = tpu.reciprocal %83 : vector<8x8xf32> -> vector<8x8xf32>
        %85 = arith.mulf %3, %84 : vector<8x8xf32>
        %cst_44 = arith.constant dense<0.000000e+00> : vector<8x128xf32>
        %86 = tpu.matmul %85, %10, %cst_44 {dimension_numbers = #tpu.dot_dimension_numbers<[1], [0], [0], [1], [0, 0, 1, 1], [], []>} : vector<8x8xf32>, vector<8x128xf32>, vector<8x128xf32> -> vector<8x128xf32>
        %87 = tpu.reciprocal %86 : vector<8x128xf32> -> vector<8x128xf32>
        %88 = arith.mulf %4, %87 : vector<8x128xf32>
        %cst_45 = arith.constant dense<0.000000e+00> : vector<8x8xf32>
        %89 = tpu.matmul %88, %11, %cst_45 {dimension_numbers = #tpu.dot_dimension_numbers<[1], [0], [0], [1], [0, 0, 1, 1], [], []>} : vector<8x128xf32>, vector<128x8xf32>, vector<8x8xf32> -> vector<8x8xf32>
        %90 = tpu.reciprocal %89 : vector<8x8xf32> -> vector<8x8xf32>
        %91 = arith.mulf %3, %90 : vector<8x8xf32>
        %cst_46 = arith.constant dense<0.000000e+00> : vector<8x128xf32>
        %92 = tpu.matmul %91, %10, %cst_46 {dimension_numbers = #tpu.dot_dimension_numbers<[1], [0], [0], [1], [0, 0, 1, 1], [], []>} : vector<8x8xf32>, vector<8x128xf32>, vector<8x128xf32> -> vector<8x128xf32>
        %93 = tpu.reciprocal %92 : vector<8x128xf32> -> vector<8x128xf32>
        %94 = arith.mulf %4, %93 : vector<8x128xf32>
        %cst_47 = arith.constant dense<0.000000e+00> : vector<8x8xf32>
        %95 = tpu.matmul %94, %11, %cst_47 {dimension_numbers = #tpu.dot_dimension_numbers<[1], [0], [0], [1], [0, 0, 1, 1], [], []>} : vector<8x128xf32>, vector<128x8xf32>, vector<8x8xf32> -> vector<8x8xf32>
        %96 = tpu.reciprocal %95 : vector<8x8xf32> -> vector<8x8xf32>
        %97 = arith.mulf %3, %96 : vector<8x8xf32>
        %cst_48 = arith.constant dense<0.000000e+00> : vector<8x128xf32>
        %98 = tpu.matmul %97, %10, %cst_48 {dimension_numbers = #tpu.dot_dimension_numbers<[1], [0], [0], [1], [0, 0, 1, 1], [], []>} : vector<8x8xf32>, vector<8x128xf32>, vector<8x128xf32> -> vector<8x128xf32>
        %99 = tpu.reciprocal %98 : vector<8x128xf32> -> vector<8x128xf32>
        %100 = arith.mulf %4, %99 : vector<8x128xf32>
        %cst_49 = arith.constant dense<0.000000e+00> : vector<8x8xf32>
        %101 = tpu.matmul %100, %11, %cst_49 {dimension_numbers = #tpu.dot_dimension_numbers<[1], [0], [0], [1], [0, 0, 1, 1], [], []>} : vector<8x128xf32>, vector<128x8xf32>, vector<8x8xf32> -> vector<8x8xf32>
        %102 = tpu.reciprocal %101 : vector<8x8xf32> -> vector<8x8xf32>
        %103 = arith.mulf %3, %102 : vector<8x8xf32>
        %cst_50 = arith.constant dense<0.000000e+00> : vector<8x128xf32>
        %104 = tpu.matmul %103, %10, %cst_50 {dimension_numbers = #tpu.dot_dimension_numbers<[1], [0], [0], [1], [0, 0, 1, 1], [], []>} : vector<8x8xf32>, vector<8x128xf32>, vector<8x128xf32> -> vector<8x128xf32>
        %105 = tpu.reciprocal %104 : vector<8x128xf32> -> vector<8x128xf32>
        %106 = arith.mulf %4, %105 : vector<8x128xf32>
        %cst_51 = arith.constant dense<0.000000e+00> : vector<8x8xf32>
        %107 = tpu.matmul %106, %11, %cst_51 {dimension_numbers = #tpu.dot_dimension_numbers<[1], [0], [0], [1], [0, 0, 1, 1], [], []>} : vector<8x128xf32>, vector<128x8xf32>, vector<8x8xf32> -> vector<8x8xf32>
        %108 = tpu.reciprocal %107 : vector<8x8xf32> -> vector<8x8xf32>
        %109 = arith.mulf %3, %108 : vector<8x8xf32>
        %cst_52 = arith.constant dense<0.000000e+00> : vector<8x128xf32>
        %110 = tpu.matmul %109, %10, %cst_52 {dimension_numbers = #tpu.dot_dimension_numbers<[1], [0], [0], [1], [0, 0, 1, 1], [], []>} : vector<8x8xf32>, vector<8x128xf32>, vector<8x128xf32> -> vector<8x128xf32>
        %111 = tpu.reciprocal %110 : vector<8x128xf32> -> vector<8x128xf32>
        %112 = arith.mulf %4, %111 : vector<8x128xf32>
        %cst_53 = arith.constant dense<0.000000e+00> : vector<8x8xf32>
        %113 = tpu.matmul %112, %11, %cst_53 {dimension_numbers = #tpu.dot_dimension_numbers<[1], [0], [0], [1], [0, 0, 1, 1], [], []>} : vector<8x128xf32>, vector<128x8xf32>, vector<8x8xf32> -> vector<8x8xf32>
        %114 = tpu.reciprocal %113 : vector<8x8xf32> -> vector<8x8xf32>
        %115 = arith.mulf %3, %114 : vector<8x8xf32>
        %cst_54 = arith.constant dense<0.000000e+00> : vector<8x128xf32>
        %116 = tpu.matmul %115, %10, %cst_54 {dimension_numbers = #tpu.dot_dimension_numbers<[1], [0], [0], [1], [0, 0, 1, 1], [], []>} : vector<8x8xf32>, vector<8x128xf32>, vector<8x128xf32> -> vector<8x128xf32>
        %117 = tpu.reciprocal %116 : vector<8x128xf32> -> vector<8x128xf32>
        %118 = arith.mulf %4, %117 : vector<8x128xf32>
        %cst_55 = arith.constant dense<0.000000e+00> : vector<8x8xf32>
        %119 = tpu.matmul %118, %11, %cst_55 {dimension_numbers = #tpu.dot_dimension_numbers<[1], [0], [0], [1], [0, 0, 1, 1], [], []>} : vector<8x128xf32>, vector<128x8xf32>, vector<8x8xf32> -> vector<8x8xf32>
        %120 = tpu.reciprocal %119 : vector<8x8xf32> -> vector<8x8xf32>
        %121 = arith.mulf %3, %120 : vector<8x8xf32>
        %cst_56 = arith.constant dense<0.000000e+00> : vector<8x128xf32>
        %122 = tpu.matmul %121, %10, %cst_56 {dimension_numbers = #tpu.dot_dimension_numbers<[1], [0], [0], [1], [0, 0, 1, 1], [], []>} : vector<8x8xf32>, vector<8x128xf32>, vector<8x128xf32> -> vector<8x128xf32>
        %123 = tpu.reciprocal %122 : vector<8x128xf32> -> vector<8x128xf32>
        %124 = arith.mulf %4, %123 : vector<8x128xf32>
        %cst_57 = arith.constant dense<0.000000e+00> : vector<8x8xf32>
        %125 = tpu.matmul %124, %11, %cst_57 {dimension_numbers = #tpu.dot_dimension_numbers<[1], [0], [0], [1], [0, 0, 1, 1], [], []>} : vector<8x128xf32>, vector<128x8xf32>, vector<8x8xf32> -> vector<8x8xf32>
        %126 = tpu.reciprocal %125 : vector<8x8xf32> -> vector<8x8xf32>
        %127 = arith.mulf %3, %126 : vector<8x8xf32>
        %cst_58 = arith.constant dense<0.000000e+00> : vector<8x128xf32>
        %128 = tpu.matmul %127, %10, %cst_58 {dimension_numbers = #tpu.dot_dimension_numbers<[1], [0], [0], [1], [0, 0, 1, 1], [], []>} : vector<8x8xf32>, vector<8x128xf32>, vector<8x128xf32> -> vector<8x128xf32>
        %129 = tpu.reciprocal %128 : vector<8x128xf32> -> vector<8x128xf32>
        %130 = arith.mulf %4, %129 : vector<8x128xf32>
        %cst_59 = arith.constant dense<0.000000e+00> : vector<8x8xf32>
        %131 = tpu.matmul %130, %11, %cst_59 {dimension_numbers = #tpu.dot_dimension_numbers<[1], [0], [0], [1], [0, 0, 1, 1], [], []>} : vector<8x128xf32>, vector<128x8xf32>, vector<8x8xf32> -> vector<8x8xf32>
        %132 = tpu.reciprocal %131 : vector<8x8xf32> -> vector<8x8xf32>
        %133 = arith.mulf %3, %132 : vector<8x8xf32>
        %cst_60 = arith.constant dense<0.000000e+00> : vector<8x128xf32>
        %134 = tpu.matmul %133, %10, %cst_60 {dimension_numbers = #tpu.dot_dimension_numbers<[1], [0], [0], [1], [0, 0, 1, 1], [], []>} : vector<8x8xf32>, vector<8x128xf32>, vector<8x128xf32> -> vector<8x128xf32>
        %135 = tpu.reciprocal %134 : vector<8x128xf32> -> vector<8x128xf32>
        %136 = arith.mulf %4, %135 : vector<8x128xf32>
        %cst_61 = arith.constant dense<0.000000e+00> : vector<8x8xf32>
        %137 = tpu.matmul %136, %11, %cst_61 {dimension_numbers = #tpu.dot_dimension_numbers<[1], [0], [0], [1], [0, 0, 1, 1], [], []>} : vector<8x128xf32>, vector<128x8xf32>, vector<8x8xf32> -> vector<8x8xf32>
        %138 = tpu.reciprocal %137 : vector<8x8xf32> -> vector<8x8xf32>
        %139 = arith.mulf %3, %138 : vector<8x8xf32>
        %cst_62 = arith.constant dense<0.000000e+00> : vector<8x128xf32>
        %140 = tpu.matmul %139, %10, %cst_62 {dimension_numbers = #tpu.dot_dimension_numbers<[1], [0], [0], [1], [0, 0, 1, 1], [], []>} : vector<8x8xf32>, vector<8x128xf32>, vector<8x128xf32> -> vector<8x128xf32>
        %141 = tpu.reciprocal %140 : vector<8x128xf32> -> vector<8x128xf32>
        %142 = arith.mulf %4, %141 : vector<8x128xf32>
        %cst_63 = arith.constant dense<0.000000e+00> : vector<8x8xf32>
        %143 = tpu.matmul %142, %11, %cst_63 {dimension_numbers = #tpu.dot_dimension_numbers<[1], [0], [0], [1], [0, 0, 1, 1], [], []>} : vector<8x128xf32>, vector<128x8xf32>, vector<8x8xf32> -> vector<8x8xf32>
        %144 = tpu.reciprocal %143 : vector<8x8xf32> -> vector<8x8xf32>
        %145 = arith.mulf %3, %144 : vector<8x8xf32>
        %cst_64 = arith.constant dense<0.000000e+00> : vector<8x128xf32>
        %146 = tpu.matmul %145, %10, %cst_64 {dimension_numbers = #tpu.dot_dimension_numbers<[1], [0], [0], [1], [0, 0, 1, 1], [], []>} : vector<8x8xf32>, vector<8x128xf32>, vector<8x128xf32> -> vector<8x128xf32>
        %147 = tpu.reciprocal %146 : vector<8x128xf32> -> vector<8x128xf32>
        %148 = arith.mulf %4, %147 : vector<8x128xf32>
        %cst_65 = arith.constant dense<0.000000e+00> : vector<8x8xf32>
        %149 = tpu.matmul %148, %11, %cst_65 {dimension_numbers = #tpu.dot_dimension_numbers<[1], [0], [0], [1], [0, 0, 1, 1], [], []>} : vector<8x128xf32>, vector<128x8xf32>, vector<8x8xf32> -> vector<8x8xf32>
        %150 = tpu.reciprocal %149 : vector<8x8xf32> -> vector<8x8xf32>
        %151 = arith.mulf %3, %150 : vector<8x8xf32>
        %cst_66 = arith.constant dense<0.000000e+00> : vector<8x128xf32>
        %152 = tpu.matmul %151, %10, %cst_66 {dimension_numbers = #tpu.dot_dimension_numbers<[1], [0], [0], [1], [0, 0, 1, 1], [], []>} : vector<8x8xf32>, vector<8x128xf32>, vector<8x128xf32> -> vector<8x128xf32>
        %153 = tpu.reciprocal %152 : vector<8x128xf32> -> vector<8x128xf32>
        %154 = arith.mulf %4, %153 : vector<8x128xf32>
        %cst_67 = arith.constant dense<0.000000e+00> : vector<8x8xf32>
        %155 = tpu.matmul %154, %11, %cst_67 {dimension_numbers = #tpu.dot_dimension_numbers<[1], [0], [0], [1], [0, 0, 1, 1], [], []>} : vector<8x128xf32>, vector<128x8xf32>, vector<8x8xf32> -> vector<8x8xf32>
        %156 = tpu.reciprocal %155 : vector<8x8xf32> -> vector<8x8xf32>
        %157 = arith.mulf %3, %156 : vector<8x8xf32>
        %cst_68 = arith.constant dense<0.000000e+00> : vector<8x128xf32>
        %158 = tpu.matmul %157, %10, %cst_68 {dimension_numbers = #tpu.dot_dimension_numbers<[1], [0], [0], [1], [0, 0, 1, 1], [], []>} : vector<8x8xf32>, vector<8x128xf32>, vector<8x128xf32> -> vector<8x128xf32>
        %159 = tpu.reciprocal %158 : vector<8x128xf32> -> vector<8x128xf32>
        %160 = arith.mulf %4, %159 : vector<8x128xf32>
        %cst_69 = arith.constant dense<0.000000e+00> : vector<8x8xf32>
        %161 = tpu.matmul %160, %11, %cst_69 {dimension_numbers = #tpu.dot_dimension_numbers<[1], [0], [0], [1], [0, 0, 1, 1], [], []>} : vector<8x128xf32>, vector<128x8xf32>, vector<8x8xf32> -> vector<8x8xf32>
        %162 = tpu.reciprocal %161 : vector<8x8xf32> -> vector<8x8xf32>
        %163 = arith.mulf %3, %162 : vector<8x8xf32>
        %cst_70 = arith.constant dense<0.000000e+00> : vector<8x128xf32>
        %164 = tpu.matmul %163, %10, %cst_70 {dimension_numbers = #tpu.dot_dimension_numbers<[1], [0], [0], [1], [0, 0, 1, 1], [], []>} : vector<8x8xf32>, vector<8x128xf32>, vector<8x128xf32> -> vector<8x128xf32>
        %165 = tpu.reciprocal %164 : vector<8x128xf32> -> vector<8x128xf32>
        %166 = arith.mulf %4, %165 : vector<8x128xf32>
        %cst_71 = arith.constant dense<0.000000e+00> : vector<8x8xf32>
        %167 = tpu.matmul %166, %11, %cst_71 {dimension_numbers = #tpu.dot_dimension_numbers<[1], [0], [0], [1], [0, 0, 1, 1], [], []>} : vector<8x128xf32>, vector<128x8xf32>, vector<8x8xf32> -> vector<8x8xf32>
        %168 = tpu.reciprocal %167 : vector<8x8xf32> -> vector<8x8xf32>
        %169 = arith.mulf %3, %168 : vector<8x8xf32>
        %cst_72 = arith.constant dense<0.000000e+00> : vector<8x128xf32>
        %170 = tpu.matmul %169, %10, %cst_72 {dimension_numbers = #tpu.dot_dimension_numbers<[1], [0], [0], [1], [0, 0, 1, 1], [], []>} : vector<8x8xf32>, vector<8x128xf32>, vector<8x128xf32> -> vector<8x128xf32>
        %171 = tpu.reciprocal %170 : vector<8x128xf32> -> vector<8x128xf32>
        %172 = arith.mulf %4, %171 : vector<8x128xf32>
        %cst_73 = arith.constant dense<0.000000e+00> : vector<8x8xf32>
        %173 = tpu.matmul %172, %11, %cst_73 {dimension_numbers = #tpu.dot_dimension_numbers<[1], [0], [0], [1], [0, 0, 1, 1], [], []>} : vector<8x128xf32>, vector<128x8xf32>, vector<8x8xf32> -> vector<8x8xf32>
        %174 = tpu.reciprocal %173 : vector<8x8xf32> -> vector<8x8xf32>
        %175 = arith.mulf %3, %174 : vector<8x8xf32>
        %cst_74 = arith.constant dense<0.000000e+00> : vector<8x128xf32>
        %176 = tpu.matmul %175, %10, %cst_74 {dimension_numbers = #tpu.dot_dimension_numbers<[1], [0], [0], [1], [0, 0, 1, 1], [], []>} : vector<8x8xf32>, vector<8x128xf32>, vector<8x128xf32> -> vector<8x128xf32>
        %177 = tpu.reciprocal %176 : vector<8x128xf32> -> vector<8x128xf32>
        %178 = arith.mulf %4, %177 : vector<8x128xf32>
        %cst_75 = arith.constant dense<0.000000e+00> : vector<8x8xf32>
        %179 = tpu.matmul %178, %11, %cst_75 {dimension_numbers = #tpu.dot_dimension_numbers<[1], [0], [0], [1], [0, 0, 1, 1], [], []>} : vector<8x128xf32>, vector<128x8xf32>, vector<8x8xf32> -> vector<8x8xf32>
        %180 = tpu.reciprocal %179 : vector<8x8xf32> -> vector<8x8xf32>
        %181 = arith.mulf %3, %180 : vector<8x8xf32>
        %cst_76 = arith.constant dense<0.000000e+00> : vector<8x128xf32>
        %182 = tpu.matmul %181, %10, %cst_76 {dimension_numbers = #tpu.dot_dimension_numbers<[1], [0], [0], [1], [0, 0, 1, 1], [], []>} : vector<8x8xf32>, vector<8x128xf32>, vector<8x128xf32> -> vector<8x128xf32>
        %183 = tpu.reciprocal %182 : vector<8x128xf32> -> vector<8x128xf32>
        %184 = arith.mulf %4, %183 : vector<8x128xf32>
        %cst_77 = arith.constant dense<0.000000e+00> : vector<8x8xf32>
        %185 = tpu.matmul %184, %11, %cst_77 {dimension_numbers = #tpu.dot_dimension_numbers<[1], [0], [0], [1], [0, 0, 1, 1], [], []>} : vector<8x128xf32>, vector<128x8xf32>, vector<8x8xf32> -> vector<8x8xf32>
        %186 = tpu.reciprocal %185 : vector<8x8xf32> -> vector<8x8xf32>
        %187 = arith.mulf %3, %186 : vector<8x8xf32>
        %cst_78 = arith.constant dense<0.000000e+00> : vector<8x128xf32>
        %188 = tpu.matmul %187, %10, %cst_78 {dimension_numbers = #tpu.dot_dimension_numbers<[1], [0], [0], [1], [0, 0, 1, 1], [], []>} : vector<8x8xf32>, vector<8x128xf32>, vector<8x128xf32> -> vector<8x128xf32>
        %189 = tpu.reciprocal %188 : vector<8x128xf32> -> vector<8x128xf32>
        %190 = arith.mulf %4, %189 : vector<8x128xf32>
        %cst_79 = arith.constant dense<0.000000e+00> : vector<8x8xf32>
        %191 = tpu.matmul %190, %11, %cst_79 {dimension_numbers = #tpu.dot_dimension_numbers<[1], [0], [0], [1], [0, 0, 1, 1], [], []>} : vector<8x128xf32>, vector<128x8xf32>, vector<8x8xf32> -> vector<8x8xf32>
        %192 = tpu.reciprocal %191 : vector<8x8xf32> -> vector<8x8xf32>
        %193 = arith.mulf %3, %192 : vector<8x8xf32>
        scf.yield %193 : vector<8x8xf32>
      } else {
        scf.yield %63 : vector<8x8xf32>
      }
      %c19_i32 = arith.constant 19 : i32
      %c0_i32_41 = arith.constant 0 : i32
      %78 = arith.select %74, %c19_i32, %c0_i32_41 : i32
      %79 = arith.addi %59, %78 : i32
      scf.yield %77, %61, %73, %79 : vector<8x8xf32>, vector<8x128xf32>, f32, i32
    }
    %15 = arith.mulf %10, %5 : vector<8x128xf32>
    %cst_14 = arith.constant dense<0.000000e+00> : vector<8x128xf32>
    %16 = tpu.matmul %14#0, %15, %cst_14 {dimension_numbers = #tpu.dot_dimension_numbers<[1], [0], [0], [1], [0, 0, 1, 1], [], []>} : vector<8x8xf32>, vector<8x128xf32>, vector<8x128xf32> -> vector<8x128xf32>
    %17 = arith.mulf %14#1, %16 : vector<8x128xf32>
    %cst_15 = arith.constant dense<0.000000e+00> : vector<8xf32>
    %18 = vector.multi_reduction <add>, %17, %cst_15 [1] : vector<8x128xf32> to vector<8xf32>
    %19 = vector.shape_cast %18 : vector<8xf32> to vector<8x1xf32>
    %20 = vector.shape_cast %19 : vector<8x1xf32> to vector<1x8x1xf32>
    %cst_16 = arith.constant dense<0.000000e+00> : vector<1xf32>
    %21 = vector.multi_reduction <add>, %20, %cst_16 [1, 2] : vector<1x8x1xf32> to vector<1xf32>
    %22 = vector.shape_cast %21 : vector<1xf32> to vector<1x1x1xf32>
    %23 = vector.extract %22[0, 0, 0] : f32 from vector<1x1x1xf32>
    %cst_17 = arith.constant 8.000000e+00 : f32
    %24 = arith.divf %23, %cst_17 : f32
    %cst_18 = arith.constant 1.000000e+00 : f32
    %25 = vector.broadcast %cst_18 : f32 to vector<8x128xf32>
    %26 = arith.subf %25, %5 : vector<8x128xf32>
    %cst_19 = arith.constant dense<0.000000e+00> : vector<8x128xf32>
    %27 = tpu.matmul %3, %26, %cst_19 {dimension_numbers = #tpu.dot_dimension_numbers<[1], [0], [0], [1], [0, 0, 1, 1], [], []>} : vector<8x8xf32>, vector<8x128xf32>, vector<8x128xf32> -> vector<8x128xf32>
    %cst_20 = arith.constant dense<0xFF800000> : vector<8xf32>
    %28 = vector.multi_reduction <maximumf>, %27, %cst_20 [1] : vector<8x128xf32> to vector<8xf32>
    %29 = vector.shape_cast %28 : vector<8xf32> to vector<8x1xf32>
    %30 = vector.broadcast %29 : vector<8x1xf32> to vector<8x128xf32>
    %31 = arith.subf %27, %30 : vector<8x128xf32>
    %32 = math.exp %31 : vector<8x128xf32>
    %cst_21 = arith.constant dense<0.000000e+00> : vector<8xf32>
    %33 = vector.multi_reduction <add>, %32, %cst_21 [1] : vector<8x128xf32> to vector<8xf32>
    %34 = vector.shape_cast %33 : vector<8xf32> to vector<8x1xf32>
    %35 = math.log %34 : vector<8x1xf32>
    %36 = arith.addf %29, %35 : vector<8x1xf32>
    %37 = vector.broadcast %36 : vector<8x1xf32> to vector<8x128xf32>
    %38 = arith.subf %27, %37 : vector<8x128xf32>
    %39 = arith.mulf %38, %2 : vector<8x128xf32>
    %cst_22 = arith.constant dense<0.000000e+00> : vector<8xf32>
    %40 = vector.multi_reduction <add>, %39, %cst_22 [1] : vector<8x128xf32> to vector<8xf32>
    %41 = vector.shape_cast %40 : vector<8xf32> to vector<8x1xf32>
    %42 = vector.shape_cast %41 : vector<8x1xf32> to vector<1x8x1xf32>
    %cst_23 = arith.constant dense<0.000000e+00> : vector<1xf32>
    %43 = vector.multi_reduction <add>, %42, %cst_23 [1, 2] : vector<1x8x1xf32> to vector<1xf32>
    %44 = vector.shape_cast %43 : vector<1xf32> to vector<1x1x1xf32>
    %45 = vector.extract %44[0, 0, 0] : f32 from vector<1x1x1xf32>
    %cst_24 = arith.constant 8.000000e+00 : f32
    %46 = arith.divf %45, %cst_24 : f32
    %cst_25 = arith.constant 0.000000e+00 : f32
    %47 = arith.subf %cst_25, %46 : f32
    %48 = arith.mulf %1, %47 : f32
    %49 = arith.addf %48, %24 : f32
    %c0_26 = arith.constant 0 : index
    %c0_27 = arith.constant 0 : index
    %50 = memref.load %arg6[%c0_26, %c0_27] : memref<1x1xf32, #tpu.memory_space<smem>>
    memref.store %47, %arg6[%c0_26, %c0_27] : memref<1x1xf32, #tpu.memory_space<smem>>
    %c0_28 = arith.constant 0 : index
    %c0_29 = arith.constant 0 : index
    %51 = memref.load %arg7[%c0_28, %c0_29] : memref<1x1xf32, #tpu.memory_space<smem>>
    memref.store %24, %arg7[%c0_28, %c0_29] : memref<1x1xf32, #tpu.memory_space<smem>>
    %c0_30 = arith.constant 0 : index
    %c0_31 = arith.constant 0 : index
    %52 = memref.load %arg8[%c0_30, %c0_31] : memref<1x1xf32, #tpu.memory_space<smem>>
    memref.store %49, %arg8[%c0_30, %c0_31] : memref<1x1xf32, #tpu.memory_space<smem>>
    return
  }
}

</mosaic_0001>

<bundles_post_ra>
// kernel: tpu_custom_call.1
= control target key start
LH: loop header
LB: loop body
LE: loop exit
PB: predicated region body
PF: predicated region fallthrough
CT: control target
= control target key end

     0   :  { %16 = vsyncpa [#allocation5], 0  ;;  %s4431_s0 = inlined_call_operand.<no memory space> [shape: f32[1,1], index: 0, kind: input, shape index: {}]   ;;  %s4432_s1 = inlined_call_operand.<no memory space> [shape: f32[1,1], index: 1, kind: input, shape index: {}]   ;;  %s4433_s2 = inlined_call_operand.hbm [shape: f32[8,128], index: 2, kind: input, shape index: {}]   ;;  %s4434_s3 = inlined_call_operand.vmem [shape: f32[8,8], index: 3, kind: input, shape index: {}]   ;;  %s4435_s4 = inlined_call_operand.hbm [shape: f32[8,128], index: 4, kind: input, shape index: {}]   ;;  %s4436_s5 = inlined_call_operand.vmem [shape: f32[8,128], index: 5, kind: input, shape index: {}]   ;;  %s4437_s6 = inlined_call_operand.hbm [shape: f32[1,1], index: 6, kind: output, shape index: {0}]   ;;  %s4438_s7 = inlined_call_operand.hbm [shape: f32[1,1], index: 7, kind: output, shape index: {1}]   ;;  %s4439_s8 = inlined_call_operand.hbm [shape: f32[1,1], index: 8, kind: output, shape index: {2}]  }
   0x1   :  { %17 = vsyncpa [#allocation8], 0 }
   0x2   :  { %18 = vsyncpa [#allocation6], 0 }
   0x3   :  { %19 = vsyncpa [#allocation11], 0  ;;  %s4016_s27 = smov [#allocation4]   ;;  %s4017_s29 = smov [#allocation7]  }
   0x4   :  { %s30_s28 = sshll.u32 %s4016_s27, 4  ;;  %s42_s30 = sshll.u32 %s4017_s29, 4  ;;  %s31_s28 = int_to_ptr.vmem [resolvable:$true] %s30_s28  ;;  %s43_s30 = int_to_ptr.vmem [resolvable:$true] %s42_s30 }
   0x5   :  { %s3910_s11 = scalar_lea.hbm %s4433_s2, 128 }
   0x6   :  { %p3911_p0 = scmp.ne.s32.totalorder %s4433_s2, %s3910_s11  ;;  %p3914_p1 = scmp.lt.u32.totalorder %s3910_s11, %s4433_s2 }
   0x8   :  { %p3916_p2 = pnand %p3914_p1, %p3911_p0 }
   0xa   :  { %3919 = shalt.err (!%p3916_p2)
}
   0xb   :  { %s3920_s16 = scalar_lea.vmem %s31_s28, 128  ;;  %p3925_p4 = scmp.lt.s32.totalorder %s31_s28, %s31_s28 }
   0xc   :  { %p3921_p3 = scmp.ne.s32.totalorder %s31_s28, %s3920_s16  ;;  %p3926_p5 = scmp.lt.s32.totalorder %s3920_s16, %s3920_s16 }
   0xe   :  { %p3927_p6 = por %p3926_p5, %p3925_p4 }
  0x10   :  { %p3928_p7 = pnand %p3927_p6, %p3921_p3 }
  0x12   :  { %3931 = shalt.err (!%p3928_p7)
}
  0x13   :  { %33 = dma.hbm_to_vmem [thread:$0]  %s4433_s2, 128, %s31_s28, [#allocation5]  }
  0x14   :  { %s3932_s21 = scalar_lea.hbm %s4435_s4, 128 }
  0x15   :  { %p3933_p8 = scmp.ne.s32.totalorder %s4435_s4, %s3932_s21  ;;  %p3936_p9 = scmp.lt.u32.totalorder %s3932_s21, %s4435_s4 }
  0x17   :  { %p3938_p10 = pnand %p3936_p9, %p3933_p8 }
  0x19   :  { %3941 = shalt.err (!%p3938_p10)
}
  0x1a   :  { %s3942_s26 = scalar_lea.vmem %s43_s30, 128  ;;  %p3947_p12 = scmp.lt.s32.totalorder %s43_s30, %s43_s30 }
  0x1b   :  { %p3943_p11 = scmp.ne.s32.totalorder %s43_s30, %s3942_s26  ;;  %p3948_p13 = scmp.lt.s32.totalorder %s3942_s26, %s3942_s26 }
  0x1d   :  { %p3949_p0 = por %p3948_p13, %p3947_p12 }
  0x1f   :  { %p3950_p1 = pnand %p3949_p0, %p3943_p11 }
  0x21   :  { %3953 = shalt.err (!%p3950_p1)
}
  0x22   :  { %45 = dma.hbm_to_vmem [thread:$0]  %s4435_s4, 128, %s43_s30, [#allocation8]  }
  0x23   :  { %3996 = dma.done.wait [#allocation5], 128  }
  0x24   :  { %3997 = vsyncadd [#allocation5], 4294967168 }
  0x25   :  { %3998 = dma.done.wait [#allocation8], 128  }
  0x26   :  { %3999 = vsyncadd [#allocation8], 4294967168  ;;  %v4096_v0 = vld [vmem:[#allocation4] sm:$0xff]  ;;  %v4103_v2 = vld [vmem:[#allocation7] sm:$0xff]  ;;  %v61_v4 = vstv %s4431_s0  ;;  %v4118_v9 = vmov 0.125  }
  0x27   :  { %v4101_v1 = vld [vmem:[%s4434_s3] sm:$0xff]  ;;  %s4116_s3 = smov 0  }
  0x28   :  { %v4108_v3 = vld [vmem:[%s4436_s5] sm:$0xff] }
  0x29   :  { %v60_v5 = vsub.f32 0.0, %v4108_v3 }
  0x2b   :  { %v62_v6 = vmul.f32 %v61_v4, %v60_v5 }
  0x2d   :  { %v63_v7 = vmul.f32 1.442695, %v62_v6 }
  0x2f   :  { %3820 = vpow2.f32 %v63_v7 }
  0x39   :  { %v4114_v8 = vpop.eup %3820 }
  0x3a LB: > { %vm76_vm0 = vcmask 64512   ;;  %v4018_v10 = vmov 0.0   ;;  %vm4019_vm1 = vmmov 0   ;;  %s224_s0 = sadd.s32 1, %s4006_s3  ;;  %v4153_v39 = vmov 0   ;;  %v4010_v9 = vphi %v4118_v9, %v4440_v9   ;;  %s4006_s3 = sphi %s4116_s3, %s3187_s3  }
  0x3b   : > { %3553 = vmatprep.subr.mxu0 %v4018_v10  ;;  %3555 = vmatprep.mubr.msk.f32.mxu0 %vm4019_vm1, %v4018_v10 }
  0x3c   : > { %3554 = vmatpush3.msra.mxu0 %v4114_v8  ;;  %3558 = vmatprep.subr.mxu1 %v4018_v10 }
  0x3d   : > { %3556 = vmatmul.mubr.msk.f32.vlgmr.msra.gmra.mrb[0].mxu0 %vm76_vm0, %v4010_v9  ;;  %3559 = vmatpush3.xpose.msra.mxu1 %v4114_v8 }
  0x3e   : > { %3560 = vmatprep.mubr.msk.f32.mxu1 %vm4019_vm1, %v4018_v10  ;;  %3563 = vmatprep.subr.mxu0 %v4018_v10 }
  0x3f   : > { %3564 = vmatpush3.msra.mxu0 %v4114_v8  ;;  %3565 = vmatprep.mubr.msk.f32.mxu0 %vm4019_vm1, %v4018_v10 }
  0x40   : > { %3568 = vmatprep.subr.mxu1 %v4018_v10  ;;  %3573 = vmatprep.subr.mxu0 %v4018_v10 }
 0x110   : > { %v146_v11 = vpop.f32.mrb[0].mxu0 }
 0x111   : > { %3822 = vrcp.f32 %v146_v11  ;;  %v3557_v12 = vpop.f32.mrb[1].mxu0 }
 0x11b   : > { %v3823_v13 = vpop.eup %3822 }
 0x11c   : > { %v151_v14 = vmul.f32 %v3823_v13, %v4103_v2 }
 0x11e   : > { %3561 = vmatmul.mubr.f32.vlgmr.msra.gmra.mrb[0].mxu1 %v151_v14 }
 0x11f   : > { %3569 = vmatpush3.xpose.msra.mxu1 %v4114_v8  ;;  %3570 = vmatprep.mubr.msk.f32.mxu1 %vm4019_vm1, %v4018_v10 }
 0x1f1   : > { %v218_v15 = vpop.f32.mrb[0].mxu1 }
 0x1f2   : > { %3824 = vrcp.f32 %v218_v15  ;;  %v3562_v16 = vpop.f32.mrb[1].mxu1 }
 0x1fc   : > { %v3825_v17 = vpop.eup %3824 }
 0x1fd   : > { %v223_v18 = vmul.f32 %v3825_v17, %v4101_v1 }
 0x1ff   : > { %3566 = vmatmul.mubr.msk.f32.vlgmr.msra.gmra.mrb[2].mxu0 %vm76_vm0, %v223_v18 }
 0x200   : > { %3574 = vmatpush3.msra.mxu0 %v4114_v8  ;;  %3575 = vmatprep.mubr.msk.f32.mxu0 %vm4019_vm1, %v4018_v10 }
 0x2d2   : > { %v294_v19 = vpop.f32.mrb[2].mxu0 }
 0x2d3   : > { %3826 = vrcp.f32 %v294_v19  ;;  %v3567_v20 = vpop.f32.mrb[3].mxu0 }
 0x2dd   : > { %v3827_v21 = vpop.eup %3826 }
 0x2de   : > { %v4140_v22 = vmul.f32 %v3827_v21, %v4103_v2 }
 0x2e0   : > { %3571 = vmatmul.mubr.f32.vlgmr.msra.gmra.mrb[2].mxu1 %v4140_v22 }
 0x3b3   : > { %v366_v23 = vpop.f32.mrb[2].mxu1 }
 0x3b4   : > { %3828 = vrcp.f32 %v366_v23  ;;  %v3572_v24 = vpop.f32.mrb[3].mxu1 }
 0x3be   : > { %v3829_v25 = vpop.eup %3828 }
 0x3bf   : > { %v4144_v26 = vmul.f32 %v3829_v25, %v4101_v1 }
 0x3c1   : > { %3576 = vmatmul.mubr.msk.f32.vlgmr.msra.gmra.mrb[4].mxu0 %vm76_vm0, %v4144_v26 }
 0x494   : > { %v441_v27 = vpop.f32.mrb[4].mxu0 }
 0x495   : > { %v445_v28 = vmul.f32 %v441_v27, %v4140_v22  ;;  %v3577_v29 = vpop.f32.mrb[5].mxu0 }
 0x497   : > { %v446_v30 = vsub.f32 %v445_v28, %v4103_v2 }
 0x499   : > { %v447_v31 = vand.u32 2147483647, %v446_v30 }
 0x49b   : > { %448 = vadd.xlane.f32.xlu0 %v447_v31 }
 0x528   : > { %v449_v32 = vpop.xlane.xlu0 %448 }
 0x529   : > { %v450_v33 = vrot.slane %v449_v32, 4 }
 0x52b   : > { %v451_v34 = vmax.f32 %v449_v32, %v450_v33 }
 0x52d   : > { %v452_v35 = vrot.slane %v451_v34, 2 }
 0x52f   : > { %v453_v36 = vmax.f32 %v451_v34, %v452_v35 }
 0x531   : > { %v454_v37 = vrot.slane %v453_v36, 1 }
 0x533   : > { %v455_v38 = vmax.f32 %v453_v36, %v454_v37 }
 0x535   : > { %3773 = vpush %v455_v38 }
 0x566   : > { %s4150_s5 = spop %3773 }
 0x567   : > { %p457_p2 = scmp.gt.f32.partialorder %s4150_s5, 0.005 }
 0x568   : > { %3830 = vrcp.f32 (%p457_p2), %v441_v27  ;;  %v4020_v40 = vmov (%p457_p2), 0.0   ;;  %vm4021_vm2 = vmmov (%p457_p2), 0  }
 0x569   : > { %460 = sbr.rel (!%p457_p2) target bundleno = 9721 (0x25f9), region = 44  ;;  %3578 = vmatprep.subr.mxu0 (%p457_p2), %v4020_v40  ;;  %3580 = vmatprep.mubr.msk.f32.mxu0 (%p457_p2), %vm4021_vm2, %v4020_v40 }
 0x56a   : > { %3579 = vmatpush3.xpose.msra.mxu0 (%p457_p2), %v4114_v8  ;;  %3583 = vmatprep.subr.mxu1 (%p457_p2), %v4020_v40 }
 0x56b   : > { %3584 = vmatpush3.msra.mxu1 (%p457_p2), %v4114_v8  ;;  %3585 = vmatprep.mubr.msk.f32.mxu1 (%p457_p2), %vm4021_vm2, %v4020_v40 }
 0x56c   : > { %3588 = vmatprep.subr.mxu1 (%p457_p2), %v4020_v40  ;;  %3593 = vmatprep.subr.mxu0 (%p457_p2), %v4020_v40 }
 0x572   : > { %v3831_v41 = vpop.eup %3830 }
 0x573   : > { %v462_v42 = vmul.f32 %v3831_v41, %v4103_v2 }
 0x575   : > { %3581 = vmatmul.mubr.f32.vlgmr.msra.gmra.mrb[0].mxu0 %v462_v42 }
 0x576   : > { %3594 = vmatpush3.msra.mxu0 %v4114_v8  ;;  %3595 = vmatprep.mubr.msk.f32.mxu0 %vm4021_vm2, %v4020_v40 }
 0x577   : > { %3603 = vmatprep.subr.mxu0 %v4020_v40 }
 0x648   : > { %v529_v43 = vpop.f32.mrb[0].mxu0 }
 0x649   : > { %3832 = vrcp.f32 %v529_v43  ;;  %v3582_v44 = vpop.f32.mrb[1].mxu0 }
 0x653   : > { %v3833_v45 = vpop.eup %3832 }
 0x654   : > { %v534_v46 = vmul.f32 %v3833_v45, %v4101_v1 }
 0x656   : > { %3586 = vmatmul.mubr.msk.f32.vlgmr.msra.gmra.mrb[0].mxu1 %vm76_vm0, %v534_v46 }
 0x657   : > { %3589 = vmatpush3.xpose.msra.mxu1 %v4114_v8  ;;  %3590 = vmatprep.mubr.msk.f32.mxu1 %vm4021_vm2, %v4020_v40 }
 0x658   : > { %3598 = vmatprep.subr.mxu1 %v4020_v40 }
 0x729   : > { %v604_v47 = vpop.f32.mrb[0].mxu1 }
 0x72a   : > { %3834 = vrcp.f32 %v604_v47  ;;  %v3587_v48 = vpop.f32.mrb[1].mxu1 }
 0x734   : > { %v3835_v49 = vpop.eup %3834 }
 0x735   : > { %v609_v50 = vmul.f32 %v3835_v49, %v4103_v2 }
 0x737   : > { %3591 = vmatmul.mubr.f32.vlgmr.msra.gmra.mrb[2].mxu1 %v609_v50 }
 0x738   : > { %3599 = vmatpush3.xpose.msra.mxu1 %v4114_v8  ;;  %3600 = vmatprep.mubr.msk.f32.mxu1 %vm4021_vm2, %v4020_v40 }
 0x739   : > { %3608 = vmatprep.subr.mxu1 %v4020_v40 }
 0x80a   : > { %v676_v51 = vpop.f32.mrb[2].mxu1 }
 0x80b   : > { %3836 = vrcp.f32 %v676_v51  ;;  %v3592_v52 = vpop.f32.mrb[3].mxu1 }
 0x815   : > { %v3837_v53 = vpop.eup %3836 }
 0x816   : > { %v681_v54 = vmul.f32 %v3837_v53, %v4101_v1 }
 0x818   : > { %3596 = vmatmul.mubr.msk.f32.vlgmr.msra.gmra.mrb[2].mxu0 %vm76_vm0, %v681_v54 }
 0x819   : > { %3604 = vmatpush3.msra.mxu0 %v4114_v8  ;;  %3605 = vmatprep.mubr.msk.f32.mxu0 %vm4021_vm2, %v4020_v40 }
 0x81a   : > { %3613 = vmatprep.subr.mxu0 %v4020_v40 }
 0x8eb   : > { %v751_v55 = vpop.f32.mrb[2].mxu0 }
 0x8ec   : > { %3838 = vrcp.f32 %v751_v55  ;;  %v3597_v56 = vpop.f32.mrb[3].mxu0 }
 0x8f6   : > { %v3839_v57 = vpop.eup %3838 }
 0x8f7   : > { %v756_v58 = vmul.f32 %v3839_v57, %v4103_v2 }
 0x8f9   : > { %3601 = vmatmul.mubr.f32.vlgmr.msra.gmra.mrb[4].mxu1 %v756_v58 }
 0x8fa   : > { %3609 = vmatpush3.xpose.msra.mxu1 %v4114_v8  ;;  %3610 = vmatprep.mubr.msk.f32.mxu1 %vm4021_vm2, %v4020_v40 }
 0x8fb   : > { %3618 = vmatprep.subr.mxu1 %v4020_v40 }
 0x9cc   : > { %v823_v59 = vpop.f32.mrb[4].mxu1 }
 0x9cd   : > { %3840 = vrcp.f32 %v823_v59  ;;  %v3602_v60 = vpop.f32.mrb[5].mxu1 }
 0x9d7   : > { %v3841_v61 = vpop.eup %3840 }
 0x9d8   : > { %v828_v62 = vmul.f32 %v3841_v61, %v4101_v1 }
 0x9da   : > { %3606 = vmatmul.mubr.msk.f32.vlgmr.msra.gmra.mrb[4].mxu0 %vm76_vm0, %v828_v62 }
 0x9db   : > { %3614 = vmatpush3.msra.mxu0 %v4114_v8  ;;  %3615 = vmatprep.mubr.msk.f32.mxu0 %vm4021_vm2, %v4020_v40 }
 0x9dc   : > { %3623 = vmatprep.subr.mxu0 %v4020_v40 }
 0xaad   : > { %v898_v63 = vpop.f32.mrb[4].mxu0 }
 0xaae   : > { %3842 = vrcp.f32 %v898_v63  ;;  %v3607_v4 = vpop.f32.mrb[5].mxu0 }
 0xab8   : > { %v3843_v5 = vpop.eup %3842 }
 0xab9   : > { %v903_v6 = vmul.f32 %v3843_v5, %v4103_v2 }
 0xabb   : > { %3611 = vmatmul.mubr.f32.vlgmr.msra.gmra.mrb[6].mxu1 %v903_v6 }
 0xabc   : > { %3619 = vmatpush3.xpose.msra.mxu1 %v4114_v8  ;;  %3620 = vmatprep.mubr.msk.f32.mxu1 %vm4021_vm2, %v4020_v40 }
 0xabd   : > { %3628 = vmatprep.subr.mxu1 %v4020_v40 }
 0xb8e   : > { %v970_v7 = vpop.f32.mrb[6].mxu1 }
 0xb8f   : > { %3844 = vrcp.f32 %v970_v7  ;;  %v3612_v9 = vpop.f32.mrb[7].mxu1 }
 0xb99   : > { %v3845_v10 = vpop.eup %3844 }
 0xb9a   : > { %v975_v11 = vmul.f32 %v3845_v10, %v4101_v1 }
 0xb9c   : > { %3616 = vmatmul.mubr.msk.f32.vlgmr.msra.gmra.mrb[6].mxu0 %vm76_vm0, %v975_v11 }
 0xb9d   : > { %3624 = vmatpush3.msra.mxu0 %v4114_v8  ;;  %3625 = vmatprep.mubr.msk.f32.mxu0 %vm4021_vm2, %v4020_v40 }
 0xb9e   : > { %3633 = vmatprep.subr.mxu0 %v4020_v40 }
 0xc6f   : > { %v1045_v12 = vpop.f32.mrb[6].mxu0 }
 0xc70   : > { %3846 = vrcp.f32 %v1045_v12  ;;  %v3617_v13 = vpop.f32.mrb[7].mxu0 }
 0xc7a   : > { %v3847_v14 = vpop.eup %3846 }
 0xc7b   : > { %v1050_v15 = vmul.f32 %v3847_v14, %v4103_v2 }
 0xc7d   : > { %3621 = vmatmul.mubr.f32.vlgmr.msra.gmra.mrb[8].mxu1 %v1050_v15 }
 0xc7e   : > { %3629 = vmatpush3.xpose.msra.mxu1 %v4114_v8  ;;  %3630 = vmatprep.mubr.msk.f32.mxu1 %vm4021_vm2, %v4020_v40 }
 0xc7f   : > { %3638 = vmatprep.subr.mxu1 %v4020_v40 }
 0xd50   : > { %v1117_v16 = vpop.f32.mrb[8].mxu1 }
 0xd51   : > { %3848 = vrcp.f32 %v1117_v16  ;;  %v3622_v17 = vpop.f32.mrb[9].mxu1 }
 0xd5b   : > { %v3849_v18 = vpop.eup %3848 }
 0xd5c   : > { %v1122_v19 = vmul.f32 %v3849_v18, %v4101_v1 }
 0xd5e   : > { %3626 = vmatmul.mubr.msk.f32.vlgmr.msra.gmra.mrb[8].mxu0 %vm76_vm0, %v1122_v19 }
 0xd5f   : > { %3634 = vmatpush3.msra.mxu0 %v4114_v8  ;;  %3635 = vmatprep.mubr.msk.f32.mxu0 %vm4021_vm2, %v4020_v40 }
 0xd60   : > { %3643 = vmatprep.subr.mxu0 %v4020_v40 }
 0xe31   : > { %v1192_v20 = vpop.f32.mrb[8].mxu0 }
 0xe32   : > { %3850 = vrcp.f32 %v1192_v20  ;;  %v3627_v21 = vpop.f32.mrb[9].mxu0 }
 0xe3c   : > { %v3851_v23 = vpop.eup %3850 }
 0xe3d   : > { %v1197_v24 = vmul.f32 %v3851_v23, %v4103_v2 }
 0xe3f   : > { %3631 = vmatmul.mubr.f32.vlgmr.msra.gmra.mrb[10].mxu1 %v1197_v24 }
 0xe40   : > { %3639 = vmatpush3.xpose.msra.mxu1 %v4114_v8  ;;  %3640 = vmatprep.mubr.msk.f32.mxu1 %vm4021_vm2, %v4020_v40 }
 0xe41   : > { %3648 = vmatprep.subr.mxu1 %v4020_v40 }
 0xf12   : > { %v1264_v25 = vpop.f32.mrb[10].mxu1 }
 0xf13   : > { %3852 = vrcp.f32 %v1264_v25  ;;  %v3632_v27 = vpop.f32.mrb[11].mxu1 }
 0xf1d   : > { %v3853_v28 = vpop.eup %3852 }
 0xf1e   : > { %v1269_v29 = vmul.f32 %v3853_v28, %v4101_v1 }
 0xf20   : > { %3636 = vmatmul.mubr.msk.f32.vlgmr.msra.gmra.mrb[10].mxu0 %vm76_vm0, %v1269_v29 }
 0xf21   : > { %3644 = vmatpush3.msra.mxu0 %v4114_v8  ;;  %3645 = vmatprep.mubr.msk.f32.mxu0 %vm4021_vm2, %v4020_v40 }
 0xf22   : > { %3653 = vmatprep.subr.mxu0 %v4020_v40 }
 0xff3   : > { %v1339_v30 = vpop.f32.mrb[10].mxu0 }
 0xff4   : > { %3854 = vrcp.f32 %v1339_v30  ;;  %v3637_v31 = vpop.f32.mrb[11].mxu0 }
 0xffe   : > { %v3855_v32 = vpop.eup %3854 }
 0xfff   : > { %v1344_v33 = vmul.f32 %v3855_v32, %v4103_v2 }
0x1001   : > { %3641 = vmatmul.mubr.f32.vlgmr.msra.gmra.mrb[12].mxu1 %v1344_v33 }
0x1002   : > { %3649 = vmatpush3.xpose.msra.mxu1 %v4114_v8  ;;  %3650 = vmatprep.mubr.msk.f32.mxu1 %vm4021_vm2, %v4020_v40 }
0x1003   : > { %3658 = vmatprep.subr.mxu1 %v4020_v40 }
0x10d4   : > { %v1411_v34 = vpop.f32.mrb[12].mxu1 }
0x10d5   : > { %3856 = vrcp.f32 %v1411_v34  ;;  %v3642_v35 = vpop.f32.mrb[13].mxu1 }
0x10df   : > { %v3857_v36 = vpop.eup %3856 }
0x10e0   : > { %v1416_v37 = vmul.f32 %v3857_v36, %v4101_v1 }
0x10e2   : > { %3646 = vmatmul.mubr.msk.f32.vlgmr.msra.gmra.mrb[12].mxu0 %vm76_vm0, %v1416_v37 }
0x10e3   : > { %3654 = vmatpush3.msra.mxu0 %v4114_v8  ;;  %3655 = vmatprep.mubr.msk.f32.mxu0 %vm4021_vm2, %v4020_v40 }
0x10e4   : > { %3663 = vmatprep.subr.mxu0 %v4020_v40 }
0x11b5   : > { %v1486_v38 = vpop.f32.mrb[12].mxu0 }
0x11b6   : > { %3858 = vrcp.f32 %v1486_v38  ;;  %v3647_v39 = vpop.f32.mrb[13].mxu0 }
0x11c0   : > { %v3859_v41 = vpop.eup %3858 }
0x11c1   : > { %v1491_v42 = vmul.f32 %v3859_v41, %v4103_v2 }
0x11c3   : > { %3651 = vmatmul.mubr.f32.vlgmr.msra.gmra.mrb[14].mxu1 %v1491_v42 }
0x11c4   : > { %3659 = vmatpush3.xpose.msra.mxu1 %v4114_v8  ;;  %3660 = vmatprep.mubr.msk.f32.mxu1 %vm4021_vm2, %v4020_v40 }
0x11c5   : > { %3668 = vmatprep.subr.mxu1 %v4020_v40 }
0x1296   : > { %v1558_v43 = vpop.f32.mrb[14].mxu1 }
0x1297   : > { %3860 = vrcp.f32 %v1558_v43  ;;  %v3652_v44 = vpop.f32.mrb[15].mxu1 }
0x12a1   : > { %v3861_v45 = vpop.eup %3860 }
0x12a2   : > { %v1563_v46 = vmul.f32 %v3861_v45, %v4101_v1 }
0x12a4   : > { %3656 = vmatmul.mubr.msk.f32.vlgmr.msra.gmra.mrb[14].mxu0 %vm76_vm0, %v1563_v46 }
0x12a5   : > { %3664 = vmatpush3.msra.mxu0 %v4114_v8  ;;  %3665 = vmatprep.mubr.msk.f32.mxu0 %vm4021_vm2, %v4020_v40 }
0x12a6   : > { %3673 = vmatprep.subr.mxu0 %v4020_v40 }
0x1377   : > { %v1633_v47 = vpop.f32.mrb[14].mxu0 }
0x1378   : > { %3862 = vrcp.f32 %v1633_v47  ;;  %v3657_v48 = vpop.f32.mrb[15].mxu0 }
0x1382   : > { %v3863_v49 = vpop.eup %3862 }
0x1383   : > { %v1638_v50 = vmul.f32 %v3863_v49, %v4103_v2 }
0x1385   : > { %3661 = vmatmul.mubr.f32.vlgmr.msra.gmra.mrb[16].mxu1 %v1638_v50 }
0x1386   : > { %3669 = vmatpush3.xpose.msra.mxu1 %v4114_v8  ;;  %3670 = vmatprep.mubr.msk.f32.mxu1 %vm4021_vm2, %v4020_v40 }
0x1387   : > { %3678 = vmatprep.subr.mxu1 %v4020_v40 }
0x1458   : > { %v1705_v51 = vpop.f32.mrb[16].mxu1 }
0x1459   : > { %3864 = vrcp.f32 %v1705_v51  ;;  %v3662_v52 = vpop.f32.mrb[17].mxu1 }
0x1463   : > { %v3865_v53 = vpop.eup %3864 }
0x1464   : > { %v1710_v54 = vmul.f32 %v3865_v53, %v4101_v1 }
0x1466   : > { %3666 = vmatmul.mubr.msk.f32.vlgmr.msra.gmra.mrb[16].mxu0 %vm76_vm0, %v1710_v54 }
0x1467   : > { %3674 = vmatpush3.msra.mxu0 %v4114_v8  ;;  %3675 = vmatprep.mubr.msk.f32.mxu0 %vm4021_vm2, %v4020_v40 }
0x1468   : > { %3683 = vmatprep.subr.mxu0 %v4020_v40 }
0x1539   : > { %v1780_v55 = vpop.f32.mrb[16].mxu0 }
0x153a   : > { %3866 = vrcp.f32 %v1780_v55  ;;  %v3667_v56 = vpop.f32.mrb[17].mxu0 }
0x1544   : > { %v3867_v57 = vpop.eup %3866 }
0x1545   : > { %v1785_v58 = vmul.f32 %v3867_v57, %v4103_v2 }
0x1547   : > { %3671 = vmatmul.mubr.f32.vlgmr.msra.gmra.mrb[18].mxu1 %v1785_v58 }
0x1548   : > { %3679 = vmatpush3.xpose.msra.mxu1 %v4114_v8  ;;  %3680 = vmatprep.mubr.msk.f32.mxu1 %vm4021_vm2, %v4020_v40 }
0x1549   : > { %3688 = vmatprep.subr.mxu1 %v4020_v40 }
0x161a   : > { %v1852_v59 = vpop.f32.mrb[18].mxu1 }
0x161b   : > { %3868 = vrcp.f32 %v1852_v59  ;;  %v3672_v60 = vpop.f32.mrb[19].mxu1 }
0x1625   : > { %v3869_v61 = vpop.eup %3868 }
0x1626   : > { %v1857_v62 = vmul.f32 %v3869_v61, %v4101_v1 }
0x1628   : > { %3676 = vmatmul.mubr.msk.f32.vlgmr.msra.gmra.mrb[18].mxu0 %vm76_vm0, %v1857_v62 }
0x1629   : > { %3684 = vmatpush3.msra.mxu0 %v4114_v8  ;;  %3685 = vmatprep.mubr.msk.f32.mxu0 %vm4021_vm2, %v4020_v40 }
0x162a   : > { %3693 = vmatprep.subr.mxu0 %v4020_v40 }
0x16fb   : > { %v1927_v63 = vpop.f32.mrb[18].mxu0 }
0x16fc   : > { %3870 = vrcp.f32 %v1927_v63  ;;  %v3677_v4 = vpop.f32.mrb[19].mxu0 }
0x1706   : > { %v3871_v5 = vpop.eup %3870 }
0x1707   : > { %v1932_v6 = vmul.f32 %v3871_v5, %v4103_v2 }
0x1709   : > { %3681 = vmatmul.mubr.f32.vlgmr.msra.gmra.mrb[20].mxu1 %v1932_v6 }
0x170a   : > { %3689 = vmatpush3.xpose.msra.mxu1 %v4114_v8  ;;  %3690 = vmatprep.mubr.msk.f32.mxu1 %vm4021_vm2, %v4020_v40 }
0x170b   : > { %3698 = vmatprep.subr.mxu1 %v4020_v40 }
0x17dc   : > { %v1999_v7 = vpop.f32.mrb[20].mxu1 }
0x17dd   : > { %3872 = vrcp.f32 %v1999_v7  ;;  %v3682_v9 = vpop.f32.mrb[21].mxu1 }
0x17e7   : > { %v3873_v10 = vpop.eup %3872 }
0x17e8   : > { %v2004_v11 = vmul.f32 %v3873_v10, %v4101_v1 }
0x17ea   : > { %3686 = vmatmul.mubr.msk.f32.vlgmr.msra.gmra.mrb[20].mxu0 %vm76_vm0, %v2004_v11 }
0x17eb   : > { %3694 = vmatpush3.msra.mxu0 %v4114_v8  ;;  %3695 = vmatprep.mubr.msk.f32.mxu0 %vm4021_vm2, %v4020_v40 }
0x17ec   : > { %3703 = vmatprep.subr.mxu0 %v4020_v40 }
0x18bd   : > { %v2074_v12 = vpop.f32.mrb[20].mxu0 }
0x18be   : > { %3874 = vrcp.f32 %v2074_v12  ;;  %v3687_v13 = vpop.f32.mrb[21].mxu0 }
0x18c8   : > { %v3875_v14 = vpop.eup %3874 }
0x18c9   : > { %v2079_v15 = vmul.f32 %v3875_v14, %v4103_v2 }
0x18cb   : > { %3691 = vmatmul.mubr.f32.vlgmr.msra.gmra.mrb[22].mxu1 %v2079_v15 }
0x18cc   : > { %3699 = vmatpush3.xpose.msra.mxu1 %v4114_v8  ;;  %3700 = vmatprep.mubr.msk.f32.mxu1 %vm4021_vm2, %v4020_v40 }
0x18cd   : > { %3708 = vmatprep.subr.mxu1 %v4020_v40 }
0x199e   : > { %v2146_v16 = vpop.f32.mrb[22].mxu1 }
0x199f   : > { %3876 = vrcp.f32 %v2146_v16  ;;  %v3692_v17 = vpop.f32.mrb[23].mxu1 }
0x19a9   : > { %v3877_v18 = vpop.eup %3876 }
0x19aa   : > { %v2151_v19 = vmul.f32 %v3877_v18, %v4101_v1 }
0x19ac   : > { %3696 = vmatmul.mubr.msk.f32.vlgmr.msra.gmra.mrb[22].mxu0 %vm76_vm0, %v2151_v19 }
0x19ad   : > { %3704 = vmatpush3.msra.mxu0 %v4114_v8  ;;  %3705 = vmatprep.mubr.msk.f32.mxu0 %vm4021_vm2, %v4020_v40 }
0x19ae   : > { %3713 = vmatprep.subr.mxu0 %v4020_v40 }
0x1a7f   : > { %v2221_v20 = vpop.f32.mrb[22].mxu0 }
0x1a80   : > { %3878 = vrcp.f32 %v2221_v20  ;;  %v3697_v21 = vpop.f32.mrb[23].mxu0 }
0x1a8a   : > { %v3879_v23 = vpop.eup %3878 }
0x1a8b   : > { %v2226_v24 = vmul.f32 %v3879_v23, %v4103_v2 }
0x1a8d   : > { %3701 = vmatmul.mubr.f32.vlgmr.msra.gmra.mrb[24].mxu1 %v2226_v24 }
0x1a8e   : > { %3709 = vmatpush3.xpose.msra.mxu1 %v4114_v8  ;;  %3710 = vmatprep.mubr.msk.f32.mxu1 %vm4021_vm2, %v4020_v40 }
0x1a8f   : > { %3718 = vmatprep.subr.mxu1 %v4020_v40 }
0x1b60   : > { %v2293_v25 = vpop.f32.mrb[24].mxu1 }
0x1b61   : > { %3880 = vrcp.f32 %v2293_v25  ;;  %v3702_v27 = vpop.f32.mrb[25].mxu1 }
0x1b6b   : > { %v3881_v28 = vpop.eup %3880 }
0x1b6c   : > { %v2298_v29 = vmul.f32 %v3881_v28, %v4101_v1 }
0x1b6e   : > { %3706 = vmatmul.mubr.msk.f32.vlgmr.msra.gmra.mrb[24].mxu0 %vm76_vm0, %v2298_v29 }
0x1b6f   : > { %3714 = vmatpush3.msra.mxu0 %v4114_v8  ;;  %3715 = vmatprep.mubr.msk.f32.mxu0 %vm4021_vm2, %v4020_v40 }
0x1b70   : > { %3723 = vmatprep.subr.mxu0 %v4020_v40 }
0x1c41   : > { %v2368_v30 = vpop.f32.mrb[24].mxu0 }
0x1c42   : > { %3882 = vrcp.f32 %v2368_v30  ;;  %v3707_v31 = vpop.f32.mrb[25].mxu0 }
0x1c4c   : > { %v3883_v32 = vpop.eup %3882 }
0x1c4d   : > { %v2373_v33 = vmul.f32 %v3883_v32, %v4103_v2 }
0x1c4f   : > { %3711 = vmatmul.mubr.f32.vlgmr.msra.gmra.mrb[26].mxu1 %v2373_v33 }
0x1c50   : > { %3719 = vmatpush3.xpose.msra.mxu1 %v4114_v8  ;;  %3720 = vmatprep.mubr.msk.f32.mxu1 %vm4021_vm2, %v4020_v40 }
0x1c51   : > { %3728 = vmatprep.subr.mxu1 %v4020_v40 }
0x1d22   : > { %v2440_v34 = vpop.f32.mrb[26].mxu1 }
0x1d23   : > { %3884 = vrcp.f32 %v2440_v34  ;;  %v3712_v35 = vpop.f32.mrb[27].mxu1 }
0x1d2d   : > { %v3885_v36 = vpop.eup %3884 }
0x1d2e   : > { %v2445_v37 = vmul.f32 %v3885_v36, %v4101_v1 }
0x1d30   : > { %3716 = vmatmul.mubr.msk.f32.vlgmr.msra.gmra.mrb[26].mxu0 %vm76_vm0, %v2445_v37 }
0x1d31   : > { %3724 = vmatpush3.msra.mxu0 %v4114_v8  ;;  %3725 = vmatprep.mubr.msk.f32.mxu0 %vm4021_vm2, %v4020_v40 }
0x1d32   : > { %3733 = vmatprep.subr.mxu0 %v4020_v40 }
0x1e03   : > { %v2515_v38 = vpop.f32.mrb[26].mxu0 }
0x1e04   : > { %3886 = vrcp.f32 %v2515_v38  ;;  %v3717_v39 = vpop.f32.mrb[27].mxu0 }
0x1e0e   : > { %v3887_v41 = vpop.eup %3886 }
0x1e0f   : > { %v2520_v42 = vmul.f32 %v3887_v41, %v4103_v2 }
0x1e11   : > { %3721 = vmatmul.mubr.f32.vlgmr.msra.gmra.mrb[28].mxu1 %v2520_v42 }
0x1e12   : > { %3729 = vmatpush3.xpose.msra.mxu1 %v4114_v8  ;;  %3730 = vmatprep.mubr.msk.f32.mxu1 %vm4021_vm2, %v4020_v40 }
0x1e13   : > { %3738 = vmatprep.subr.mxu1 %v4020_v40 }
0x1ee4   : > { %v2587_v43 = vpop.f32.mrb[28].mxu1 }
0x1ee5   : > { %3888 = vrcp.f32 %v2587_v43  ;;  %v3722_v44 = vpop.f32.mrb[29].mxu1 }
0x1eef   : > { %v3889_v45 = vpop.eup %3888 }
0x1ef0   : > { %v2592_v46 = vmul.f32 %v3889_v45, %v4101_v1 }
0x1ef2   : > { %3726 = vmatmul.mubr.msk.f32.vlgmr.msra.gmra.mrb[28].mxu0 %vm76_vm0, %v2592_v46 }
0x1ef3   : > { %3734 = vmatpush3.msra.mxu0 %v4114_v8  ;;  %3735 = vmatprep.mubr.msk.f32.mxu0 %vm4021_vm2, %v4020_v40 }
0x1ef4   : > { %3743 = vmatprep.subr.mxu0 %v4020_v40 }
0x1fc5   : > { %v2662_v47 = vpop.f32.mrb[28].mxu0 }
0x1fc6   : > { %3890 = vrcp.f32 %v2662_v47  ;;  %v3727_v48 = vpop.f32.mrb[29].mxu0 }
0x1fd0   : > { %v3891_v49 = vpop.eup %3890 }
0x1fd1   : > { %v2667_v50 = vmul.f32 %v3891_v49, %v4103_v2 }
0x1fd3   : > { %3731 = vmatmul.mubr.f32.vlgmr.msra.gmra.mrb[30].mxu1 %v2667_v50 }
0x1fd4   : > { %3739 = vmatpush3.xpose.msra.mxu1 %v4114_v8  ;;  %3740 = vmatprep.mubr.msk.f32.mxu1 %vm4021_vm2, %v4020_v40 }
0x1fd5   : > { %3748 = vmatprep.subr.mxu1 %v4020_v40 }
0x20a6   : > { %v2734_v51 = vpop.f32.mrb[30].mxu1 }
0x20a7   : > { %3892 = vrcp.f32 %v2734_v51  ;;  %v3732_v52 = vpop.f32.mrb[31].mxu1 }
0x20b1   : > { %v3893_v53 = vpop.eup %3892 }
0x20b2   : > { %v2739_v54 = vmul.f32 %v3893_v53, %v4101_v1 }
0x20b4   : > { %3736 = vmatmul.mubr.msk.f32.vlgmr.msra.gmra.mrb[30].mxu0 %vm76_vm0, %v2739_v54 }
0x20b5   : > { %3744 = vmatpush3.msra.mxu0 %v4114_v8  ;;  %3745 = vmatprep.mubr.msk.f32.mxu0 %vm4021_vm2, %v4020_v40 }
0x20b6   : > { %3753 = vmatprep.subr.mxu0 %v4020_v40 }
0x2187   : > { %v2809_v55 = vpop.f32.mrb[30].mxu0 }
0x2188   : > { %3894 = vrcp.f32 %v2809_v55  ;;  %v3737_v56 = vpop.f32.mrb[31].mxu0 }
0x2192   : > { %v3895_v57 = vpop.eup %3894 }
0x2193   : > { %v2814_v58 = vmul.f32 %v3895_v57, %v4103_v2 }
0x2195   : > { %3741 = vmatmul.mubr.f32.vlgmr.msra.gmra.mrb[32].mxu1 %v2814_v58 }
0x2196   : > { %3749 = vmatpush3.xpose.msra.mxu1 %v4114_v8  ;;  %3750 = vmatprep.mubr.msk.f32.mxu1 %vm4021_vm2, %v4020_v40 }
0x2197   : > { %3758 = vmatprep.subr.mxu1 %v4020_v40 }
0x2268   : > { %v2881_v59 = vpop.f32.mrb[32].mxu1 }
0x2269   : > { %3896 = vrcp.f32 %v2881_v59  ;;  %v3742_v60 = vpop.f32.mrb[33].mxu1 }
0x2273   : > { %v3897_v61 = vpop.eup %3896 }
0x2274   : > { %v2886_v62 = vmul.f32 %v3897_v61, %v4101_v1 }
0x2276   : > { %3746 = vmatmul.mubr.msk.f32.vlgmr.msra.gmra.mrb[32].mxu0 %vm76_vm0, %v2886_v62 }
0x2277   : > { %3754 = vmatpush3.msra.mxu0 %v4114_v8  ;;  %3755 = vmatprep.mubr.msk.f32.mxu0 %vm4021_vm2, %v4020_v40 }
0x2349   : > { %v2956_v63 = vpop.f32.mrb[32].mxu0 }
0x234a   : > { %3898 = vrcp.f32 %v2956_v63  ;;  %v3747_v4 = vpop.f32.mrb[33].mxu0 }
0x2354   : > { %v3899_v5 = vpop.eup %3898 }
0x2355   : > { %v2961_v6 = vmul.f32 %v3899_v5, %v4103_v2 }
0x2357   : > { %3751 = vmatmul.mubr.f32.vlgmr.msra.gmra.mrb[34].mxu1 %v2961_v6 }
0x2358   : > { %3759 = vmatpush3.xpose.msra.mxu1 %v4114_v8  ;;  %3760 = vmatprep.mubr.msk.f32.mxu1 %vm4021_vm2, %v4020_v40 }
0x242a   : > { %v3028_v7 = vpop.f32.mrb[34].mxu1 }
0x242b   : > { %3900 = vrcp.f32 %v3028_v7  ;;  %v3752_v9 = vpop.f32.mrb[35].mxu1 }
0x2435   : > { %v3901_v10 = vpop.eup %3900 }
0x2436   : > { %v3033_v11 = vmul.f32 %v3901_v10, %v4101_v1 }
0x2438   : > { %3756 = vmatmul.mubr.msk.f32.vlgmr.msra.gmra.mrb[34].mxu0 %vm76_vm0, %v3033_v11 }
0x250b   : > { %v3103_v12 = vpop.f32.mrb[34].mxu0 }
0x250c   : > { %3902 = vrcp.f32 %v3103_v12  ;;  %v3757_v13 = vpop.f32.mrb[35].mxu0 }
0x2516   : > { %v3903_v14 = vpop.eup %3902 }
0x2517   : > { %v3108_v15 = vmul.f32 %v3903_v14, %v4103_v2 }
0x2519   : > { %3761 = vmatmul.mubr.f32.vlgmr.msra.gmra.mrb[36].mxu1 %v3108_v15 }
0x25ec   : > { %v3175_v16 = vpop.f32.mrb[36].mxu1 }
0x25ed   : > { %3904 = vrcp.f32 %v3175_v16  ;;  %v3762_v17 = vpop.f32.mrb[37].mxu1 }
0x25f7   : > { %v3905_v18 = vpop.eup %3904 }
0x25f8   : > { %v3180_v39 = vmul.f32 %v3905_v18, %v4101_v1  }
0x25f9 PF: > { %s3784_s30 = scalar_select %p457_p2, 0, 1  ;;  %v4014_v39 = vphi %v4153_v39, %v3180_v39  }
0x25fa   : > { %s3186_s12 = scalar_select %p457_p2, 19, 0 }
0x25fb   : > { %v3781_v40 = vstv %s3784_s30 }
0x25fc   : > { %vm3782_vm3 = vcmp.ne.s32.totalorder %v3781_v40, 0  ;;  %s3187_s3 = sadd.s32 %s3186_s12, %s224_s0  }
0x25fd   : > { %v3783_v19 = vsel %vm3782_vm3, %v4144_v26, %v4014_v39   ;;  %p71_p3 = scmp.lt.s32.totalorder %s3187_s3, 5000 }
0x25fe   : > { %v4440_v9 = vmov %v3783_v19 }
0x25ff   : > { %p72_p4 = pnand %p457_p2, %p71_p3 }
0x2600   :  { %v3280_v20 = vsub.f32 (%p72_p4), 1.0, %v4108_v3  ;;  %v4022_v21 = vmov (%p72_p4), 0.0   ;;  %vm4023_vm4 = vmmov (%p72_p4), 0   ;;  %v3188_v26 = vmul.f32 (%p72_p4), %v4114_v8, %v4108_v3  ;;  %s3954_s17 = scalar_lea.hbm (%p72_p4), %s4438_s7, 16 }
0x2601   :  { %75 = sbr.rel (!%p72_p4) target bundleno = 58 (0x3a), region = 86  ;;  %3768 = vmatprep.subr.mxu1 (%p72_p4), %v4022_v21  ;;  %3770 = vmatprep.mubr.msk.f32.mxu1 (%p72_p4), %vm4023_vm4, %v4022_v21  ;;  %vm3266_vm5 = vcmask (%p72_p4), 7168   ;;  %p3955_p5 = scmp.ne.s32.totalorder (%p72_p4), %s4438_s7, %s3954_s17 }
0x2602   :  { %3769 = vmatpush3.msra.mxu1 (%p72_p4), %v3280_v20  ;;  %3763 = vmatprep.subr.mxu0 (%p72_p4), %v4022_v21  ;;  %p3958_p6 = scmp.lt.u32.totalorder (%p72_p4), %s3954_s17, %s4438_s7 }
0x2603   :  { %3771 = vmatmul.mubr.msk.f32.vlgmr.msra.gmra.mrb[0].mxu1 (%p72_p4), %vm76_vm0, %v4101_v1  ;;  %3765 = vmatprep.mubr.msk.f32.mxu0 (%p72_p4), %vm4023_vm4, %v4022_v21 }
0x2604   :  { %3764 = vmatpush3.msra.mxu0 (%p72_p4), %v3188_v26  ;;  %p3960_p7 = pnand (%p72_p4), %p3958_p6, %p3955_p5 }
0x2605   :  { %3766 = vmatmul.mubr.msk.f32.vlgmr.msra.gmra.mrb[0].mxu0 (%p72_p4), %vm76_vm0, %v3783_v19 }
0x26d6   :  { %v3350_v23 = vpop.f32.mrb[0].mxu1 }
0x26d7   :  { %3354 = vmax.xlane.f32.xlu0 %v3350_v23  ;;  %v3772_v2 = vpop.f32.mrb[1].mxu1 }
0x26d8   :  { %v3259_v29 = vpop.f32.mrb[0].mxu0 }
0x26d9   :  { %v3263_v30 = vmul.f32 %v3259_v29, %v4140_v22  ;;  %v3767_v1 = vpop.f32.mrb[1].mxu0 }
0x26db   :  { %3264 = vadd.xlane.f32.xlu1 %v3263_v30 }
0x2764   :  { %v3355_v24 = vpop.xlane.xlu0 %3354 }
0x2765   :  { %v3356_v25 = vsub.f32 %v3350_v23, %v3355_v24 }
0x2767   :  { %v3357_v27 = vmul.f32 1.442695, %v3356_v25 }
0x2768   :  { %v3265_v35 = vpop.xlane.xlu1 %3264 }
0x2769   :  { %3906 = vpow2.f32 %v3357_v27  ;;  %v3267_v36 = vsel %vm3266_vm5, %v3265_v35, 0.0 }
0x2773   :  { %v3907_v28 = vpop.eup %3906 }
0x2774   :  { %3359 = vadd.xlane.f32.xlu0 %v3907_v28 }
0x2778   :  { %3268 = vadd.xlane.f32.xlu0 %v3267_v36 }
0x2801   :  { %v3360_v31 = vpop.xlane.xlu0 %3359 }
0x2802   :  { %3908 = vlog2.f32 %v3360_v31 }
0x2805   :  { %v3269_v39 = vpop.xlane.xlu0 %3268 }
0x2806   :  { %v3270_v22 = vrot.slane %v3269_v39, 4 }
0x2808   :  { %v3271_v41 = vadd.f32 %v3270_v22, %v3269_v39 }
0x280a   :  { %v3272_v42 = vrot.slane %v3271_v41, 2 }
0x280c   :  { %v3909_v3 = vpop.eup %3908  ;;  %v3273_v43 = vadd.f32 %v3272_v42, %v3271_v41 }
0x280d   :  { %v3362_v8 = vmul.f32 0.6931472, %v3909_v3 }
0x280e   :  { %v3274_v44 = vrot.slane %v3273_v43, 1 }
0x280f   :  { %v3363_v32 = vadd.f32 %v3362_v8, %v3355_v24 }
0x2810   :  { %v3275_v45 = vadd.f32 %v3274_v44, %v3273_v43 }
0x2811   :  { %v3364_v33 = vsub.f32 %v3350_v23, %v3363_v32 }
0x2812   :  { %3775 = vpush %v3275_v45 }
0x2813   :  { %v3365_v34 = vmul.f32 %v3364_v33, %v4096_v0 }
0x2815   :  { %3366 = vadd.xlane.f32.xlu1 %v3365_v34 }
0x2843   :  { %s4385_s13 = spop %3775 }
0x2844   :  { %s3279_s14 = smul.f32 0.125, %s4385_s13 }
0x2846   :  { %3387 = sst [smem:[#allocation10]] %s3279_s14 }
0x28a2   :  { %v3367_v37 = vpop.xlane.xlu1 %3366 }
0x28a3   :  { %v3368_v38 = vsel %vm3266_vm5, %v3367_v37, 0.0 }
0x28a4   :  { %3369 = vadd.xlane.f32.xlu1 %v3368_v38 }
0x28a5   :  { %3963 = shalt.err (!%p3960_p7)
}
0x28a6   :  { %s4024_s22 = smov [#allocation10]  }
0x28a7   :  { %3405 = dma.smem_to_hbm %s4024_s22, 16, %s4438_s7, [#allocation11]  }
0x28a8   :  { %s3964_s7 = scalar_lea.hbm %s4437_s6, 16 }
0x28a9   :  { %p3965_p8 = scmp.ne.s32.totalorder %s4437_s6, %s3964_s7  ;;  %p3968_p9 = scmp.lt.u32.totalorder %s3964_s7, %s4437_s6 }
0x28ab   :  { %p3970_p10 = pnand %p3968_p9, %p3965_p8 }
0x2931   :  { %v3370_v0 = vpop.xlane.xlu1 %3369 }
0x2932   :  { %v3371_v46 = vrot.slane %v3370_v0, 4 }
0x2934   :  { %v3372_v47 = vadd.f32 %v3371_v46, %v3370_v0 }
0x2936   :  { %v3373_v48 = vrot.slane %v3372_v47, 2 }
0x2938   :  { %v3374_v49 = vadd.f32 %v3373_v48, %v3372_v47 }
0x293a   :  { %v3375_v50 = vrot.slane %v3374_v49, 1 }
0x293c   :  { %v3376_v51 = vadd.f32 %v3375_v50, %v3374_v49 }
0x293e   :  { %3777 = vpush %v3376_v51 }
0x296f   :  { %s3778_s25 = spop %3777 }
0x2970   :  { %s3380_s26 = smul.f32 0.125, %s3778_s25 }
0x2972   :  { %s3381_s2 = ssub.f32 0.0, %s3380_s26 }
0x2974   :  { %s3382_s29 = smul.f32 %s3381_s2, %s4432_s1  ;;  %3385 = sst [smem:[#allocation9]] %s3381_s2 }
0x2975   :  { %3973 = shalt.err (!%p3970_p10)
}
0x2976   :  { %s4025_s5 = smov [#allocation9]   ;;  %s3383_s1 = sadd.f32 %s3382_s29, %s3279_s14 }
0x2977   :  { %3397 = dma.smem_to_hbm %s4025_s5, 16, %s4437_s6, [#allocation6]  }
0x2978   :  { %3389 = sst [smem:[#allocation12]] %s3383_s1  ;;  %s3974_s17 = scalar_lea.hbm %s4439_s8, 16 }
0x2979   :  { %p3975_p11 = scmp.ne.s32.totalorder %s4439_s8, %s3974_s17  ;;  %p3978_p12 = scmp.lt.u32.totalorder %s3974_s17, %s4439_s8 }
0x297b   :  { %p3980_p13 = pnand %p3978_p12, %p3975_p11 }
0x297d   :  { %3983 = shalt.err (!%p3980_p13)
}
0x297e   :  { %s4026_s22 = smov [#allocation12]  }
0x297f   :  { %3413 = dma.smem_to_hbm %s4026_s22, 16, %s4439_s8, [#allocation11]  }
0x2980   :  { %4000 = dma.done.wait [#allocation6], 16  }
0x2981   :  { %4001 = vsyncadd [#allocation6], 4294967280 }
0x2982   :  { %4002 = dma.done.wait [#allocation11], 32  }
0x2983   :  { %4003 = vsyncadd [#allocation11], 4294967264 }
0x2984   :  { %3423 = sfence }
0x2985   :  { %3424 = vsyncpa [#allocation5], 1 }
0x2986   :  { %3425 = vsyncpa [#allocation8], 1 }
0x2987   :  { %3426 = vsyncpa [#allocation6], 1 }
0x2988   :  { %3427 = vsyncpa [#allocation11], 1 }

</bundles_post_ra>
